<compile_context>
chip_gen: v7x
topology: tpu7x:2x2x1
jax: 0.10.0
libtpu: 0.0.40
codegen_flags: <defaults>
</compile_context>

<pallas_src>
import functools

import numpy as np
import jax
import jax.numpy as jnp
from jax import lax
from jax.experimental import pallas as pl
from jax.experimental.pallas import tpu as pltpu


def _cdiv(a, b):
    return -(-a // b)


def _round_up(a, b):
    return _cdiv(a, b) * b


def _bf16_eup_default():
    """bf16 VPU/EUP path exists on v6e/v7x; keep f32 transcendentals elsewhere."""
    try:
        kind = jax.devices()[0].device_kind.lower()
    except Exception:
        return False
    return any(t in kind for t in ("v6", "v7", "tpu6", "tpu7"))


def _logicseg_kernel(yp_ref, yt_ref, r_ref, wc_ref, wd_ref, out_ref, *,
                     n_cls, cls_pad, n_lay, tb, b_valid,
                     scale_e, scale_fit, use_bce, eup_bf16):
    """One batch tile of the (un-normalized, xB) LogicSeg loss; layout (classes, batch_tile)."""
    x = yp_ref[...].astype(jnp.float32)            # (C, TB) logits
    y = yt_ref[...].astype(jnp.float32)            # (C, TB) targets

    # sigmoid + BCE in logit space: exp/log on the EUP, optionally in bf16 (v6e/v7x).
    te = jnp.bfloat16 if eup_bf16 else jnp.float32
    e_t = jnp.exp(-jnp.abs(x.astype(te)))          # exp(-|x|) in te
    e = e_t.astype(jnp.float32)
    inv = pl.reciprocal(1.0 + e, approx=True)
    s = jnp.where(x >= 0.0, inv, e * inv)          # sigmoid(x), numerically stable, f32

    # One fused bf16 MXU contraction for all rule matrices:
    #   Z = [H; (ae/L)*M - (ad/n_chi)*H^T; P] @ s
    z = jnp.dot(r_ref[...], s.astype(jnp.bfloat16),
                preferred_element_type=jnp.float32)
    child_or = jnp.minimum(z[0:n_cls], 1.0)              # fuzzy OR of children (per parent)
    comb = z[cls_pad:cls_pad + n_cls]                    # (ae/L)*sib_mass - (ad/n_chi)*parent_prob
    layer_sum = z[2 * cls_pad:2 * cls_pad + n_lay]       # per-layer prob mass

    # wc/wd already carry alpha_c/n_par and alpha_d/n_chi; the M/H^T scales live in R.
    rule = wc_ref[...] * (1.0 - child_or) + wd_ref[...] + comb
    acc = s * rule
    if use_bce:
        log1pe = jnp.log(1.0 + e_t).astype(jnp.float32)  # log(1+exp(-|x|)) in te
        acc = acc + scale_fit * (log1pe + jnp.maximum(x, 0.0) - x * y)

    col = jnp.sum(acc, axis=0, keepdims=True)            # (1, TB)
    col = col + scale_e * jnp.sum(jnp.maximum(1.0 - layer_sum, 0.0),
                                  axis=0, keepdims=True)
    if not use_bce:                                      # soft-label cross-entropy path
        m = jnp.max(x, axis=0, keepdims=True)
        zc = x - m
        lse = jnp.log(jnp.sum(jnp.exp(zc), axis=0, keepdims=True))
        col = col - scale_fit * jnp.sum(y * (zc - lse), axis=0, keepdims=True)

    # Unconditional mask: the ragged last block's out-of-range columns hold garbage.
    col_ids = pl.program_id(0) * tb + lax.broadcasted_iota(jnp.int32, (1, tb), 1)
    col = jnp.where(col_ids < b_valid, col, 0.0)

    # One scalar partial per tile, written into its own lane-dense (1, 128) block so the
    # batch grid axis stays 'parallel' (megacore on v7x); final reduce is in the wrapper.
    partial = jnp.sum(col, axis=1, keepdims=True)        # (1, 1)
    lane = lax.broadcasted_iota(jnp.int32, (1, 128), 1)
    out_ref[...] = jnp.where(lane == 0, partial, 0.0)


class LogicSegLoss:
    """JAX/Pallas port of the PyTorch LogicSegLoss forward pass."""

    def __init__(self, H_raw, P_raw, M_raw, alpha_c, alpha_d, alpha_e, alpha_bce,
                 use_bce=True, block_cols=16384, min_tiles=4, eup_bf16=None):
        H = jnp.asarray(H_raw, jnp.float32)
        P = jnp.asarray(P_raw, jnp.float32)
        M = jnp.asarray(M_raw, jnp.float32)
        C = int(H.shape[0])
        L = int(P.shape[0])
        assert H.shape == (C, C) and M.shape == (C, C) and P.shape == (L, C)
        assert block_cols % 128 == 0, "block_cols must be a multiple of 128 (lane width)"
        self.C, self.L = C, L
        self.Cp = _round_up(C, 8)               # 8-aligned row offsets inside R
        self.Lp = _round_up(L, 8)
        self.block_cols = int(block_cols)
        self.min_tiles = max(1, int(min_tiles))
        self.eup_bf16 = _bf16_eup_default() if eup_bf16 is None else bool(eup_bf16)
        self.use_bce = bool(use_bce)

        # Hoisted hierarchy constants.
        hc = (jnp.sum(H, axis=1) > 0).astype(jnp.float32)   # class has children (is a parent)
        hp = (jnp.sum(H, axis=0) > 0).astype(jnp.float32)   # class has a parent (is a child)
        n_parents = max(float(jnp.sum(hc)), 1.0)
        n_children = max(float(jnp.sum(hp)), 1.0)

        # All 1/B-free scales are baked in here; the single 1/B factor is applied to the
        # final scalar in __call__, so R / wc / wd are fully static across calls.
        self.wc = (float(alpha_c) / n_parents) * hc[:, None]     # (C, 1)
        self.wd = (float(alpha_d) / n_children) * hp[:, None]    # (C, 1)
        self.scale_e = float(alpha_e) / L
        self.scale_fit = (float(alpha_bce) / C) if self.use_bce else float(alpha_bce)

        # Fused rule matrix (bf16 MXU operand, exact 0/1 where unscaled):
        #   rows [0, C)       : H                          -> clipped child-OR (scaled in-kernel)
        #   rows [Cp, Cp+C)   : (ae/L)*M - (ad/n_chi)*H^T  -> pre-scaled exclusion - decomposition
        #   rows [2Cp, 2Cp+L) : P                          -> per-layer sums (scaled in-kernel)
        comb = (float(alpha_e) / L) * M - (float(alpha_d) / n_children) * H.T
        R = jnp.zeros((2 * self.Cp + self.Lp, C), jnp.float32)
        R = R.at[0:C].set(H)
        R = R.at[self.Cp:self.Cp + C].set(comb)
        R = R.at[2 * self.Cp:2 * self.Cp + L].set(P)
        self.R = R.astype(jnp.bfloat16)

    def __call__(self, y_pred, y_true, transposed_inputs=False):
        if transposed_inputs:
            # Preferred path: the producer already emits channel-major (C, B) logits,
            # so no transpose copy materializes in HBM before the kernel.
            C, B = y_pred.shape
            yp, yt = y_pred, y_true
        else:
            B, C = y_pred.shape
            # Fallback: XLA materializes a (C, B) copy of both inputs.  If possible,
            # change the producing layer to emit channel-major outputs instead.
            yp = jnp.swapaxes(y_pred, 0, 1)
            yt = jnp.swapaxes(y_true, 0, 1)
        assert C == self.C and yt.shape == yp.shape

        # Big lane-dense batch tiles, clamped so >= min_tiles grid steps exist (megacore).
        tb = max(128, min(self.block_cols, _round_up(_cdiv(B, self.min_tiles), 128)))
        nb = _cdiv(B, tb)

        kernel = functools.partial(
            _logicseg_kernel,
            n_cls=C, cls_pad=self.Cp, n_lay=self.L, tb=tb, b_valid=B,
            scale_e=self.scale_e, scale_fit=self.scale_fit,
            use_bce=self.use_bce, eup_bf16=self.eup_bf16)

        rrows = self.R.shape[0]
        grid_spec = pltpu.PrefetchScalarGridSpec(
            num_scalar_prefetch=0,
            grid=(nb,),
            in_specs=[
                pl.BlockSpec((C, tb), lambda i: (0, i)),        # y_pred^T tile (ragged last block)
                pl.BlockSpec((C, tb), lambda i: (0, i)),        # y_true^T tile
                pl.BlockSpec((rrows, C), lambda i: (0, 0)),     # fused rule matrix (resident)
                pl.BlockSpec((C, 1), lambda i: (0, 0)),         # alpha_c/n_par * has_children
                pl.BlockSpec((C, 1), lambda i: (0, 0)),         # alpha_d/n_chi * has_parent
            ],
            out_specs=pl.BlockSpec((1, 128), lambda i: (0, i)),  # per-tile partial (lane-dense)
        )

        partials = pl.pallas_call(
            kernel,
            out_shape=jax.ShapeDtypeStruct((1, 128 * nb), jnp.float32),
            grid_spec=grid_spec,
            compiler_params=pltpu.CompilerParams(
                dimension_semantics=("parallel",),
                vmem_limit_bytes=32 * 1024 * 1024),
        )(yp, yt, self.R, self.wc, self.wd)

        # Single 1/B normalization applied to the tiny final reduction.
        return jnp.sum(partials) * (1.0 / B)


def _reference_loss(y_pred, y_true, H, P, M, alpha_c, alpha_d, alpha_e, alpha_bce):
    """Pure-JAX reference with the same re-derived rule semantics (sanity check)."""
    x = y_pred.astype(jnp.float32)
    y = y_true.astype(jnp.float32)
    s = jax.nn.sigmoid(x)
    B, C = x.shape
    L = P.shape[0]
    hc = (H.sum(1) > 0).astype(jnp.float32)
    hp = (H.sum(0) > 0).astype(jnp.float32)
    child_or = jnp.clip(s @ H.T, 0.0, 1.0)
    l_c = jnp.sum(s * (1.0 - child_or) * hc) / (B * jnp.maximum(hc.sum(), 1.0))
    parent_s = s @ H
    l_d = jnp.sum(s * (1.0 - parent_s) * hp) / (B * jnp.maximum(hp.sum(), 1.0))
    sib = s @ M.T
    excl = jnp.sum(s * sib)
    cover = jnp.sum(jnp.maximum(1.0 - s @ P.T, 0.0))
    l_e = (excl + cover) / (B * L)
    bce = jnp.mean(jnp.maximum(x, 0.0) - x * y + jnp.log1p(jnp.exp(-jnp.abs(x))))
    return alpha_c * l_c + alpha_d * l_d + alpha_e * l_e + alpha_bce * bce


def _build_hierarchy():
    """Deterministic 3-layer tree: layer0 = {0,1}, layer1 = {2..5}, layer2 = {6..13}."""
    C, L = 14, 3
    parent = {2: 0, 3: 0, 4: 1, 5: 1,
              6: 2, 7: 2, 8: 3, 9: 3, 10: 4, 11: 4, 12: 5, 13: 5}
    layer_of = {c: (0 if c < 2 else (1 if c < 6 else 2)) for c in range(C)}

    H = np.zeros((C, C), np.float32)
    for c, p in parent.items():
        H[p, c] = 1.0
    P = np.zeros((L, C), np.float32)
    for c in range(C):
        P[layer_of[c], c] = 1.0
    M = np.zeros((C, C), np.float32)
    for u in range(C):
        for v in range(C):
            if u != v and layer_of[u] == layer_of[v]:
                M[u, v] = 1.0
    return jnp.asarray(H), jnp.asarray(P), jnp.asarray(M)


if __name__ == "__main__":
    B, C = 200, 14                       # not a multiple of 128 -> exercises the ragged last block
    H, P, M = _build_hierarchy()

    key = jax.random.PRNGKey(0)
    k1, k2 = jax.random.split(key)
    y_pred = jax.random.normal(k1, (B, C), jnp.float32)

    # ground-truth multi-hot: a valid root-to-leaf path per sample
    leaf = jax.random.randint(k2, (B,), 6, 14)
    parent = (leaf - 6) // 2 + 2
    grand = (parent - 2) // 2
    y_true = (jax.nn.one_hot(leaf, C) + jax.nn.one_hot(parent, C)
              + jax.nn.one_hot(grand, C)).astype(jnp.float32)

    loss_fn = LogicSegLoss(H, P, M, alpha_c=0.2, alpha_d=0.2, alpha_e=0.2,
                           alpha_bce=1.0, use_bce=True)

    ref = _reference_loss(y_pred, y_true, H, P, M, 0.2, 0.2, 0.2, 1.0)

    # Fallback path: (B, C) inputs, wrapper transposes.
    loss = loss_fn(y_pred, y_true)
    jax.block_until_ready(loss)
    assert loss.shape == () and bool(jnp.isfinite(loss))
    rel_err = abs(float(loss) - float(ref)) / max(abs(float(ref)), 1e-6)
    assert rel_err < 2e-2, (float(loss), float(ref), rel_err)

    # Preferred path: channel-major (C, B) inputs, no wrapper transpose copy in HBM.
    loss_t = loss_fn(y_pred.T, y_true.T, transposed_inputs=True)
    jax.block_until_ready(loss_t)
    rel_err_t = abs(float(loss_t) - float(ref)) / max(abs(float(ref)), 1e-6)
    assert rel_err_t < 2e-2, (float(loss_t), float(ref), rel_err_t)

    print("KERNEL_OK")
</pallas_src>

<mosaic_0001>
module attributes {stable_mosaic.version = 11 : i64} {
  func.func @_logicseg_kernel(%arg0: i32, %arg1: memref<14x128xf32, #tpu.memory_space<vmem>>, %arg2: memref<14x128xf32, #tpu.memory_space<vmem>>, %arg3: memref<40x14xbf16, #tpu.memory_space<vmem>>, %arg4: memref<14x1xf32, #tpu.memory_space<vmem>>, %arg5: memref<14x1xf32, #tpu.memory_space<vmem>>, %arg6: memref<1x128xf32, #tpu.memory_space<vmem>>) attributes {dimension_semantics = [#tpu.dimension_semantics<parallel>], iteration_bounds = array<i64: 2>, scalar_prefetch = 0 : i64, scratch_operands = 0 : i64, tpu.core_type = #tpu.core_type<tc>, window_params = [{transform_indices = @transform_0, window_bounds = array<i64: 14, 128>}, {transform_indices = @transform_1, window_bounds = array<i64: 14, 128>}, {pipeline_mode = #tpu.pipeline_mode<synchronous>, transform_indices = @transform_2, window_bounds = array<i64: 40, 14>}, {pipeline_mode = #tpu.pipeline_mode<synchronous>, transform_indices = @transform_3, window_bounds = array<i64: 14, 1>}, {pipeline_mode = #tpu.pipeline_mode<synchronous>, transform_indices = @transform_4, window_bounds = array<i64: 14, 1>}, {transform_indices = @transform_5, window_bounds = array<i64: 1, 128>}]} {
    %c0 = arith.constant 0 : index
    %c0_0 = arith.constant 0 : index
    %0 = vector.load %arg1[%c0, %c0_0] : memref<14x128xf32, #tpu.memory_space<vmem>>, vector<14x128xf32>
    %c0_1 = arith.constant 0 : index
    %c0_2 = arith.constant 0 : index
    %1 = vector.load %arg2[%c0_1, %c0_2] : memref<14x128xf32, #tpu.memory_space<vmem>>, vector<14x128xf32>
    %2 = math.absf %0 : vector<14x128xf32>
    %cst = arith.constant 0.000000e+00 : f32
    %3 = vector.broadcast %cst : f32 to vector<14x128xf32>
    %4 = arith.subf %3, %2 : vector<14x128xf32>
    %5 = math.exp %4 : vector<14x128xf32>
    %cst_3 = arith.constant 1.000000e+00 : f32
    %6 = vector.broadcast %cst_3 : f32 to vector<14x128xf32>
    %7 = arith.addf %6, %5 : vector<14x128xf32>
    %8 = tpu.reciprocal %7 {approx = true} : vector<14x128xf32> -> vector<14x128xf32>
    %cst_4 = arith.constant 0.000000e+00 : f32
    %9 = vector.broadcast %cst_4 : f32 to vector<14x128xf32>
    %10 = arith.cmpf oge, %0, %9 : vector<14x128xf32>
    %11 = arith.mulf %5, %8 : vector<14x128xf32>
    %12 = arith.select %10, %8, %11 : vector<14x128xi1>, vector<14x128xf32>
    %c0_5 = arith.constant 0 : index
    %c0_6 = arith.constant 0 : index
    %13 = vector.load %arg3[%c0_5, %c0_6] : memref<40x14xbf16, #tpu.memory_space<vmem>>, vector<40x14xbf16>
    %14 = arith.truncf %12 : vector<14x128xf32> to vector<14x128xbf16>
    %cst_7 = arith.constant dense<0.000000e+00> : vector<40x128xf32>
    %15 = tpu.matmul %13, %14, %cst_7 {dimension_numbers = #tpu.dot_dimension_numbers<[1], [0], [0], [1], [0, 0, 1, 1], [], []>} : vector<40x14xbf16>, vector<14x128xbf16>, vector<40x128xf32> -> vector<40x128xf32>
    %16 = vector.extract_strided_slice %15 {offsets = [0, 0], sizes = [14, 128], strides = [1, 1]} : vector<40x128xf32> to vector<14x128xf32>
    %cst_8 = arith.constant 1.000000e+00 : f32
    %17 = vector.broadcast %cst_8 : f32 to vector<14x128xf32>
    %18 = arith.minimumf %16, %17 : vector<14x128xf32>
    %19 = vector.extract_strided_slice %15 {offsets = [16, 0], sizes = [14, 128], strides = [1, 1]} : vector<40x128xf32> to vector<14x128xf32>
    %20 = vector.extract_strided_slice %15 {offsets = [32, 0], sizes = [3, 128], strides = [1, 1]} : vector<40x128xf32> to vector<3x128xf32>
    %c0_9 = arith.constant 0 : index
    %c0_10 = arith.constant 0 : index
    %21 = vector.load %arg4[%c0_9, %c0_10] : memref<14x1xf32, #tpu.memory_space<vmem>>, vector<14x1xf32>
    %cst_11 = arith.constant 1.000000e+00 : f32
    %22 = vector.broadcast %cst_11 : f32 to vector<14x128xf32>
    %23 = arith.subf %22, %18 : vector<14x128xf32>
    %24 = vector.broadcast %21 : vector<14x1xf32> to vector<14x128xf32>
    %25 = arith.mulf %24, %23 : vector<14x128xf32>
    %c0_12 = arith.constant 0 : index
    %c0_13 = arith.constant 0 : index
    %26 = vector.load %arg5[%c0_12, %c0_13] : memref<14x1xf32, #tpu.memory_space<vmem>>, vector<14x1xf32>
    %27 = vector.broadcast %26 : vector<14x1xf32> to vector<14x128xf32>
    %28 = arith.addf %25, %27 : vector<14x128xf32>
    %29 = arith.addf %28, %19 : vector<14x128xf32>
    %30 = arith.mulf %12, %29 : vector<14x128xf32>
    %cst_14 = arith.constant 1.000000e+00 : f32
    %31 = vector.broadcast %cst_14 : f32 to vector<14x128xf32>
    %32 = arith.addf %31, %5 : vector<14x128xf32>
    %33 = math.log %32 : vector<14x128xf32>
    %cst_15 = arith.constant 0.000000e+00 : f32
    %34 = vector.broadcast %cst_15 : f32 to vector<14x128xf32>
    %35 = arith.maximumf %0, %34 : vector<14x128xf32>
    %36 = arith.addf %33, %35 : vector<14x128xf32>
    %37 = arith.mulf %0, %1 : vector<14x128xf32>
    %38 = arith.subf %36, %37 : vector<14x128xf32>
    %cst_16 = arith.constant 0.0714285746 : f32
    %39 = vector.broadcast %cst_16 : f32 to vector<14x128xf32>
    %40 = arith.mulf %39, %38 : vector<14x128xf32>
    %41 = arith.addf %30, %40 : vector<14x128xf32>
    %cst_17 = arith.constant dense<0.000000e+00> : vector<128xf32>
    %42 = vector.multi_reduction <add>, %41, %cst_17 [0] : vector<14x128xf32> to vector<128xf32>
    %43 = vector.shape_cast %42 : vector<128xf32> to vector<1x128xf32>
    %cst_18 = arith.constant 1.000000e+00 : f32
    %44 = vector.broadcast %cst_18 : f32 to vector<3x128xf32>
    %45 = arith.subf %44, %20 : vector<3x128xf32>
    %cst_19 = arith.constant 0.000000e+00 : f32
    %46 = vector.broadcast %cst_19 : f32 to vector<3x128xf32>
    %47 = arith.maximumf %45, %46 : vector<3x128xf32>
    %cst_20 = arith.constant dense<0.000000e+00> : vector<128xf32>
    %48 = vector.multi_reduction <add>, %47, %cst_20 [0] : vector<3x128xf32> to vector<128xf32>
    %49 = vector.shape_cast %48 : vector<128xf32> to vector<1x128xf32>
    %cst_21 = arith.constant 0.0666666701 : f32
    %50 = vector.broadcast %cst_21 : f32 to vector<1x128xf32>
    %51 = arith.mulf %50, %49 : vector<1x128xf32>
    %52 = arith.addf %43, %51 : vector<1x128xf32>
    %c128_i32 = arith.constant 128 : i32
    %53 = arith.muli %arg0, %c128_i32 : i32
    %54 = tpu.iota {dimensions = array<i32: 1>} : vector<1x128xi32>
    %55 = vector.broadcast %53 : i32 to vector<1x128xi32>
    %56 = arith.addi %55, %54 : vector<1x128xi32>
    %c200_i32 = arith.constant 200 : i32
    %57 = vector.broadcast %c200_i32 : i32 to vector<1x128xi32>
    %58 = arith.cmpi slt, %56, %57 : vector<1x128xi32>
    %cst_22 = arith.constant 0.000000e+00 : f32
    %59 = vector.broadcast %cst_22 : f32 to vector<1x128xf32>
    %60 = arith.select %58, %52, %59 : vector<1x128xi1>, vector<1x128xf32>
    %cst_23 = arith.constant dense<0.000000e+00> : vector<1xf32>
    %61 = vector.multi_reduction <add>, %60, %cst_23 [1] : vector<1x128xf32> to vector<1xf32>
    %62 = vector.shape_cast %61 : vector<1xf32> to vector<1x1xf32>
    %63 = tpu.iota {dimensions = array<i32: 1>} : vector<1x128xi32>
    %c0_i32 = arith.constant 0 : i32
    %64 = vector.broadcast %c0_i32 : i32 to vector<1x128xi32>
    %65 = arith.cmpi eq, %63, %64 : vector<1x128xi32>
    %cst_24 = arith.constant 0.000000e+00 : f32
    %66 = vector.shape_cast %62 : vector<1x1xf32> to vector<1x1xf32>
    %67 = vector.broadcast %66 : vector<1x1xf32> to vector<1x128xf32>
    %68 = vector.broadcast %cst_24 : f32 to vector<1x128xf32>
    %69 = arith.select %65, %67, %68 : vector<1x128xi1>, vector<1x128xf32>
    %c0_25 = arith.constant 0 : index
    %c0_26 = arith.constant 0 : index
    %70 = vector.load %arg6[%c0_25, %c0_26] : memref<1x128xf32, #tpu.memory_space<vmem>>, vector<1x128xf32>
    tpu.vector_store %arg6[%c0_25, %c0_26], %69 {strides = array<i32>} : memref<1x128xf32, #tpu.memory_space<vmem>>, vector<1x128xf32>,
    return
  }
  func.func @transform_0(%arg0: i32) -> (i32, i32) {
    %c0_i32 = arith.constant 0 : i32
    %c0_i32_0 = arith.constant 0 : i32
    return %c0_i32, %arg0 : i32, i32
  }
  func.func @transform_1(%arg0: i32) -> (i32, i32) {
    %c0_i32 = arith.constant 0 : i32
    %c0_i32_0 = arith.constant 0 : i32
    return %c0_i32, %arg0 : i32, i32
  }
  func.func @transform_2(%arg0: i32) -> (i32, i32) {
    %c0_i32 = arith.constant 0 : i32
    %c0_i32_0 = arith.constant 0 : i32
    %c0_i32_1 = arith.constant 0 : i32
    return %c0_i32, %c0_i32_0 : i32, i32
  }
  func.func @transform_3(%arg0: i32) -> (i32, i32) {
    %c0_i32 = arith.constant 0 : i32
    %c0_i32_0 = arith.constant 0 : i32
    %c0_i32_1 = arith.constant 0 : i32
    return %c0_i32, %c0_i32_0 : i32, i32
  }
  func.func @transform_4(%arg0: i32) -> (i32, i32) {
    %c0_i32 = arith.constant 0 : i32
    %c0_i32_0 = arith.constant 0 : i32
    %c0_i32_1 = arith.constant 0 : i32
    return %c0_i32, %c0_i32_0 : i32, i32
  }
  func.func @transform_5(%arg0: i32) -> (i32, i32) {
    %c0_i32 = arith.constant 0 : i32
    %c0_i32_0 = arith.constant 0 : i32
    return %c0_i32, %arg0 : i32, i32
  }
}

</mosaic_0001>

<bundles_post_ra>
// kernel: tpu_custom_call.1
= control target key start
LH: loop header
LB: loop body
LE: loop exit
PB: predicated region body
PF: predicated region fallthrough
CT: control target
= control target key end

     0   :  { %10 = vsyncpa [#allocation5], 0  ;;  %s972_s0 = inlined_call_operand.vmem [shape: f32[14,200], index: 0, kind: input, shape index: {}]   ;;  %s973_s1 = inlined_call_operand.vmem [shape: f32[14,200], index: 1, kind: input, shape index: {}]   ;;  %s974_s2 = inlined_call_operand.vmem [shape: bf16[40,14], index: 2, kind: input, shape index: {}]   ;;  %s975_s3 = inlined_call_operand.vmem [shape: f32[14,1], index: 3, kind: input, shape index: {}]   ;;  %s976_s4 = inlined_call_operand.vmem [shape: f32[14,1], index: 4, kind: input, shape index: {}]   ;;  %s977_s5 = inlined_call_operand.hbm [shape: f32[1,256], index: 5, kind: output, shape index: {}]  }
   0x1   :  { %12 = vsyncpa [#allocation5 + $0x1], 0  ;;  %s804_s18 = smov 0   ;;  %s806_s19 = smov 0  }
   0x2   :  { %s808_s20 = smov 0   ;;  %s810_s21 = smov 0  }
   0x3 LB: > { %s825_s22 = sadd.s32 4294967295, %s768_s21   ;;  %s607_s23 = sadd.s32 4294967294, %s768_s21   ;;  %s768_s21 = sphi %s810_s21, %s984_s21   ;;  %s764_s20 = sphi %s808_s20, %s983_s20   ;;  %s760_s19 = sphi %s806_s19, %s982_s19   ;;  %s756_s18 = sphi %s804_s18, %s981_s18  }
   0x4   : > { %s829_s24 = sadd.s32 1, %s768_s21   ;;  %s25_s25 = sadd.s32 1, %s764_s20 }
   0x5   : > { %s22_s26 = ssub.s32 %s768_s21, %s829_s24  ;;  %p32_p0 = scmp.ne.s32.totalorder %s764_s20, %s760_s19 }
   0x6   : > { %p23_p1 = scmp.eq.s32.totalorder %s22_s26, 0  ;;  %p33_p2 = scmp.eq.s32.totalorder %s768_s21, 0 }
   0x7   : > { %p151_p3 = scmp.eq.s32.totalorder %s825_s22, 1  ;;  %p156_p4 = scmp.ne.s32.totalorder %s760_s19, %s756_s18 }
   0x8   : > { %s841_s27 = scalar_select %p23_p1, %s764_s20, %s25_s25  }
   0x9   : > { %p843_p5 = por %p33_p2, %p32_p0  ;;  %p847_p6 = por %p151_p3, %p32_p0 }
   0xa   : > { %p157_p7 = scmp.eq.s32.totalorder %s607_s23, 1  ;;  %p609_p9 = scmp.ge.s32.totalorder %s768_s21, 2 }
   0xc   : > { %p851_p8 = por %p157_p7, %p156_p4  ;;  %182 = sbr.rel (%p609_p9) target bundleno = 33 (0x21), region = 28 }
  0x13   : > { %185 = sbr.rel (!%p843_p5) target bundleno = 26 (0x1a), region = 32  ;;  %s187_s6 = sand.u32 (%p843_p5), 1, %s764_s20  }
  0x14   : > { %s611_s7 = sshll.u32 (%p843_p5), %s768_s21, 3  ;;  %s610_s8 = sshll.u32 (%p843_p5), %s187_s6, 4 }
  0x15   : > { %s191_s11 = scalar_lea.vmem (%p843_p5), %s972_s0, %s611_s7  ;;  %s189_s12 = scalar_lea.vmem (%p843_p5), [#allocation2], %s610_s8 }
  0x16   : > { %v221_v0 = vld [vmem:[%s191_s11] sm:$0xff] (%p843_p5)  ;;  %v223_v1 = vld [vmem:[%s191_s11 + $0x10] sm:$0xff] (%p843_p5) }
  0x17   : > { %222 = vst [vmem:[%s189_s12] sm:$0xff] (%p843_p5), %v221_v0  ;;  %224 = vst [vmem:[%s189_s12 + $0x8] sm:$0xff] (%p843_p5), %v223_v1 }
  0x1a PF: > { %230 = sbr.rel (!%p843_p5) target bundleno = 33 (0x21), region = 70  ;;  %s232_s13 = sand.u32 (%p843_p5), 1, %s764_s20  }
  0x1b   : > { %s613_s14 = sshll.u32 (%p843_p5), %s768_s21, 3  ;;  %s612_s15 = sshll.u32 (%p843_p5), %s232_s13, 4 }
  0x1c   : > { %s236_s23 = scalar_lea.vmem (%p843_p5), %s973_s1, %s613_s14  ;;  %s234_s25 = scalar_lea.vmem (%p843_p5), [#allocation3], %s612_s15 }
  0x1d   : > { %v266_v2 = vld [vmem:[%s236_s23] sm:$0xff] (%p843_p5)  ;;  %v268_v3 = vld [vmem:[%s236_s23 + $0x10] sm:$0xff] (%p843_p5) }
  0x1e   : > { %267 = vst [vmem:[%s234_s25] sm:$0xff] (%p843_p5), %v266_v2  ;;  %269 = vst [vmem:[%s234_s25 + $0x8] sm:$0xff] (%p843_p5), %v268_v3 }
  0x21 PF: > { %p614_p10 = scmp.ge.s32.totalorder %s768_s21, 1  ;;  %p274_p11 = scmp.lt.s32.totalorder %s768_s21, 3 }
  0x23   : > { %p275_p12 = pnand %p614_p10, %p274_p11 }
  0x24   : > { %s875_s26 = sand.u32 (!%p275_p12), 1, %s760_s19   ;;  %v770_v4 = vmov (!%p275_p12), 0.0   ;;  %vm771_vm0 = vmmov (!%p275_p12), 0   ;;  %v772_v7 = vmov (!%p275_p12), 0   ;;  %v433_v10 = vld [vmem:[%s975_s3 + $0x8] sm:$0x3f] (!%p275_p12) }
  0x25   : > { %278 = sbr.rel (%p275_p12) target bundleno = 483 (0x1e3), region = 108  ;;  %631 = vmatprep.subr.bf16.mxu0 (!%p275_p12), %v770_v4  ;;  %645 = vmatprep.subr.bf16.mxu1 (!%p275_p12), %v770_v4  ;;  %s615_s28 = sshll.u32 (!%p275_p12), %s875_s26, 4  ;;  %v449_v11 = vld [vmem:[%s976_s4 + $0x8] sm:$0x3f] (!%p275_p12)  ;;  %v432_v14 = vld [vmem:[%s975_s3] sm:$0xff] (!%p275_p12)  ;;  %vm370_vm3 = vcmask (!%p275_p12), 1046528  }
  0x26   : > { %633 = vmatprep.mubr.msk.bf16.mxu0 (!%p275_p12), %vm771_vm0, %v770_v4  ;;  %637 = vmatprep.mubr.msk.bf16.mxu1 (!%p275_p12), %vm771_vm0, %v770_v4  ;;  %s283_s6 = scalar_lea.vmem (!%p275_p12), [#allocation2], %s615_s28  ;;  %v448_v15 = vld [vmem:[%s976_s4] sm:$0xff] (!%p275_p12)  ;;  %v692_v31 = vld [vmem:[%s974_s2 + $0x8] sm:$0xff] (!%p275_p12)   ;;  %vm360_vm4 = vcmask (!%p275_p12), 113664   ;;  %v693_v32 = vld [vmem:[%s974_s2 + $0x10] ss:$0 sps:$4 sm:$0xff] (!%p275_p12)  }
  0x27   : > { %v882_v5 = vld [vmem:[%s283_s6] sm:$0xff] (!%p275_p12)  ;;  %v884_v6 = vld [vmem:[%s283_s6 + $0x8] sm:$0x3f] (!%p275_p12)  ;;  %689 = vset.pattern.permute.xlu0 (!%p275_p12), %v772_v7  ;;  %690 = vset.pattern.permute.xlu1 (!%p275_p12), %v772_v7  ;;  %s290_s7 = scalar_lea.vmem (!%p275_p12), [#allocation3], %s615_s28  ;;  %vm493_vm5 = vcmask (!%p275_p12), 1042432   ;;  %vm482_vm6 = vcmask (!%p275_p12), 1045504  }
  0x28   : > { %v323_v8 = vand.u32 (!%p275_p12), 2147483647, %v882_v5  ;;  %v324_v9 = vand.u32 (!%p275_p12), 2147483647, %v884_v6  ;;  %443 = vperm.xlu0 (!%p275_p12), %689, %v433_v10   ;;  %457 = vperm.xlu1 (!%p275_p12), %690, %v449_v11   ;;  %vm335_vm1 = vcmp.ge.f32.partialorder (!%p275_p12), %v882_v5, 0.0  ;;  %vm336_vm2 = vcmp.ge.f32.partialorder (!%p275_p12), %v884_v6, 0.0 }
  0x29   : > { %v691_v30 = vld [vmem:[%s974_s2] sm:$0xff] (!%p275_p12)   ;;  %v471_v39 = vmax.f32 (!%p275_p12), %v884_v6, 0.0  ;;  %v322_v43 = vld [vmem:[%s290_s7 + $0x8] sm:$0x3f] (!%p275_p12)  ;;  %v470_v44 = vmax.f32 (!%p275_p12), %v882_v5, 0.0  ;;  %s623_s28 = sshll.u32 (!%p275_p12), %s825_s22, 7 }
  0x2a   : > { %v325_v12 = vsub.f32 (!%p275_p12), 0.0, %v323_v8  ;;  %v326_v13 = vsub.f32 (!%p275_p12), 0.0, %v324_v9  ;;  %v321_v48 = vld [vmem:[%s290_s7] sm:$0xff] (!%p275_p12)  ;;  %v475_v55 = vmul.f32 (!%p275_p12), %v322_v43, %v884_v6  ;;  %s317_s8 = scalar_lea.vmem (!%p275_p12), [#allocation4], %s875_s26  ;;  %s624_s10 = sshll.u32 (!%p275_p12), %s825_s22, 4 }
  0x2b   : > { %v474_v59 = vmul.f32 (!%p275_p12), %v321_v48, %v882_v5  ;;  %s528_s9 = sshll.u32 (!%p275_p12), %s317_s8, 4  ;;  %s928_s13 = scalar_lea.hbm (!%p275_p12), %s977_s5, %s624_s10  ;;  %s930_s9 = int_to_ptr.vmem [resolvable:$true] %s528_s9 }
  0x2c   : > { %v327_v16 = vmul.f32 1.442695, %v325_v12  ;;  %v329_v17 = vmul.f32 1.442695, %v326_v13  ;;  %438 = vperm.xlu0 %689, %v432_v14   ;;  %452 = vperm.xlu1 %690, %v448_v15   ;;  %s516_s14 = scalar_lea.sflag [#allocation5], %s875_s26  ;;  %s706_s15 = scalar_lea.vmem %s930_s9, 16 }
  0x2d   : > { %p707_p13 = scmp.ne.s32.totalorder %s930_s9, %s706_s15  ;;  %s773_s22 = smov [#allocation4]  }
  0x2e   : > { %694 = vpow2.f32 %v327_v16  ;;  %s710_s16 = sshll.u32 %s773_s22, 4  ;;  %s711_s16 = int_to_ptr.vmem [resolvable:$false] %s710_s16 }
  0x2f   : > { %696 = vpow2.f32 %v329_v17  ;;  %p708_p0 = pnand %p707_p13, %p847_p6  ;;  %s712_s17 = scalar_lea.vmem %s711_s16, 32 }
  0x30   : > { %p713_p2 = scmp.lt.s32.totalorder %s930_s9, %s711_s16  ;;  %p714_p3 = scmp.lt.s32.totalorder %s712_s17, %s706_s15 }
  0x31   : > { %p709_p1 = pneg %p708_p0 }
  0x32   : > { %p715_p4 = por %p714_p3, %p713_p2 }
  0x34   : > { %p716_p5 = pnand %p715_p4, %p709_p1 }
  0x38   : > { %v695_v18 = vpop.eup %694 }
  0x39   : > { %v697_v19 = vpop.eup %696  ;;  %v331_v20 = vadd.f32 1.0, %v695_v18 }
  0x3a   : > { %v332_v21 = vadd.f32 1.0, %v697_v19 }
  0x3b   : > { %698 = vrcp.f32 %v331_v20 }
  0x3c   : > { %700 = vrcp.f32 %v332_v21 }
  0x3d   : > { %702 = vlog2.f32 %v331_v20 }
  0x3e   : > { %704 = vlog2.f32 %v332_v21 }
  0x45   : > { %v699_v22 = vpop.eup %698 }
  0x46   : > { %v701_v23 = vpop.eup %700  ;;  %v337_v24 = vmul.f32 %v699_v22, %v695_v18 }
  0x47   : > { %v338_v25 = vmul.f32 %v701_v23, %v697_v19  ;;  %v703_v34 = vpop.eup %702 }
  0x48   : > { %v339_v26 = vsel %vm335_vm1, %v699_v22, %v337_v24  ;;  %v705_v35 = vpop.eup %704  ;;  %v467_v40 = vmul.f32 0.6931472, %v703_v34 }
  0x49   : > { %v902_v27 = vsel %vm336_vm2, %v701_v23, %v338_v25  ;;  %v469_v38 = vmul.f32 0.6931472, %v705_v35  ;;  %v504_v23 = vlaneseq }
  0x4a   : > { %v346_v28 = vpack.c.bf16 %v902_v27, %v339_v26  ;;  %v472_v58 = vadd.f32 %v470_v44, %v467_v40 }
  0x4b   : > { %v473_v54 = vadd.f32 %v471_v39, %v469_v38 }
  0x4c   : > { %v372_v29 = vsel %vm370_vm3, %v346_v28, 0  ;;  %v476_v1 = vsub.f32 %v472_v58, %v474_v59 }
  0x4d   : > { %632 = vmatpush3.bf16.msra.mxu0 %v372_v29  ;;  %646 = vmatpush3.bf16.msra.mxu1 %v372_v29  ;;  %v477_v63 = vsub.f32 %v473_v54, %v475_v55 }
  0x4e   : > { %v478_v5 = vmul.f32 0.071428575, %v476_v1 }
  0x4f   : > { %v479_v6 = vmul.f32 0.071428575, %v477_v63 }
  0x50   : > { %634 = vmatmul.mubr.msk.bf16.vlgmr.msra.gmra.mrb[0].mxu0 %vm360_vm4, %v691_v30  ;;  %638 = vmatmul.mubr.msk.bf16.vlgmr.msra.gmra.mrb[0].mxu1 %vm360_vm4, %v692_v31 }
  0x51   : > { %641 = vmatprep.mubr.msk.bf16.mxu1 %vm771_vm0, %v770_v4 }
  0x58   : > { %642 = vmatmul.mubr.msk.bf16.gmra.mrb[4].mxu1 %vm360_vm4, %v693_v32 }
  0xa7   : > { %v444_v33 = vpop.permute.xlu0 %443  ;;  %v458_v36 = vpop.permute.xlu1 %457 }
  0xab   : > { %v439_v37 = vpop.permute.xlu0 %438  ;;  %v453_v57 = vpop.permute.xlu1 %452 }
 0x123   : > { %v408_v41 = vpop.f32.mrb[0].mxu0  ;;  %v416_v42 = vpop.f32.mrb[0].mxu1 }
 0x124   : > { %v430_v45 = vmin.f32 %v408_v41, 1.0  ;;  %v635_v46 = vpop.f32.mrb[1].mxu0  ;;  %v639_v47 = vpop.f32.mrb[1].mxu1 }
 0x125   : > { %v411_v49 = vpop.f32.mrb[2].mxu0  ;;  %v419_v50 = vpop.f32.mrb[2].mxu1 }
 0x126   : > { %v434_v51 = vsub.f32 1.0, %v430_v45  ;;  %v431_v52 = vmin.f32 %v411_v49, 1.0  ;;  %v636_v53 = vpop.f32.mrb[3].mxu0  ;;  %v640_v56 = vpop.f32.mrb[3].mxu1 }
 0x128   : > { %v435_v60 = vsub.f32 1.0, %v431_v52  ;;  %v446_v61 = vmul.f32 %v439_v37, %v434_v51 }
 0x12a   : > { %v447_v62 = vmul.f32 %v444_v33, %v435_v60  ;;  %v460_v0 = vadd.f32 %v453_v57, %v446_v61 }
 0x12b   : > { %v424_v2 = vpop.f32.mrb[4].mxu1 }
 0x12c   : > { %v461_v3 = vadd.f32 %v458_v36, %v447_v62  ;;  %v462_v4 = vadd.f32 %v460_v0, %v416_v42  ;;  %v491_v7 = vsub.f32 1.0, %v424_v2  ;;  %v643_v8 = vpop.f32.mrb[5].mxu1 }
 0x12d   : > { %v427_v9 = vpop.f32.mrb[6].mxu1 }
 0x12e   : > { %v463_v10 = vadd.f32 %v461_v3, %v419_v50  ;;  %v492_v11 = vmax.f32 %v491_v7, 0.0  ;;  %v644_v12 = vpop.f32.mrb[7].mxu1  ;;  %v464_v13 = vmul.f32 %v462_v4, %v339_v26  ;;  %v505_v26 = vand.u32 127, %v504_v23 }
 0x130   : > { %v465_v14 = vmul.f32 %v463_v10, %v902_v27  ;;  %v494_v15 = vsel %vm493_vm5, %v492_v11, 0.0  ;;  %v480_v18 = vadd.f32 %v478_v5, %v464_v13  ;;  %v506_v27 = vstv %s623_s28 }
 0x131   : > { %v495_v16 = vrot.slane %v494_v15, 4  ;;  %v507_v33 = vadd.s32 %v506_v27, %v505_v26  ;;  %vm512_vm8 = vcmp.eq.s32.totalorder %v505_v26, 0 }
 0x132   : > { %v481_v17 = vadd.f32 %v479_v6, %v465_v14 }
 0x133   : > { %v496_v19 = vadd.f32 %v495_v16, %v494_v15  ;;  %vm508_vm7 = vcmp.lt.s32.totalorder %v507_v33, 200 }
 0x134   : > { %v483_v20 = vsel %vm482_vm6, %v481_v17, 0.0 }
 0x135   : > { %v484_v21 = vadd.f32 %v483_v20, %v480_v18  ;;  %v497_v22 = vrot.slane %v496_v19, 2 }
 0x137   : > { %v498_v24 = vadd.f32 %v497_v22, %v496_v19  ;;  %v485_v25 = vrot.slane %v484_v21, 4 }
 0x139   : > { %v486_v28 = vadd.f32 %v485_v25, %v484_v21  ;;  %v499_v29 = vrot.slane %v498_v24, 1 }
 0x13b   : > { %v487_v30 = vrot.slane %v486_v28, 2  ;;  %v500_v32 = vadd.f32 %v499_v29, %v498_v24 }
 0x13d   : > { %v488_v31 = vadd.f32 %v487_v30, %v486_v28  ;;  %v501_v36 = vmul.f32 0.06666667, %v500_v32 }
 0x13f   : > { %v489_v34 = vrot.slane %v488_v31, 1 }
 0x141   : > { %v490_v35 = vadd.f32 %v489_v34, %v488_v31 }
 0x143   : > { %v502_v37 = vadd.f32 %v501_v36, %v490_v35 }
 0x145   : > { %v509_v38 = vsel %vm508_vm7, %v502_v37, 0.0 }
 0x146   : > { %510 = vadd.xlane.f32.xlu0 %v509_v38 }
 0x1d3   : > { %v511_v39 = vpop.xlane.xlu0 %510 }
 0x1d4   : > { %v513_v40 = vsel %vm512_vm8, %v511_v39, 0.0 }
 0x1d5   : > { %514 = vst [vmem:[%s317_s8] sm:$0x1] %v513_v40 }
 0x1d6   : > { %719 = shalt.err (!%p716_p5)
}
 0x1d7   : > { %s720_s26 = scalar_lea.hbm %s928_s13, 16  ;;  %s724_s6 = scalar_lea.hbm %s977_s5, 32 }
 0x1d8   : > { %p721_p7 = scmp.ne.s32.totalorder %s928_s13, %s720_s26  ;;  %p725_p12 = scmp.lt.u32.totalorder %s928_s13, %s977_s5 }
 0x1d9   : > { %p726_p13 = scmp.lt.u32.totalorder %s724_s6, %s720_s26  ;;  %p728_p1 = scmp.lt.u32.totalorder %s720_s26, %s928_s13 }
 0x1da   : > { %p722_p10 = pnand %p721_p7, %p847_p6 }
 0x1db   : > { %p727_p0 = por %p726_p13, %p725_p12 }
 0x1dc   : > { %p723_p11 = pneg %p722_p10 }
 0x1dd   : > { %p729_p2 = por %p728_p1, %p727_p0 }
 0x1df   : > { %p730_p3 = pnand %p729_p2, %p723_p11 }
 0x1e1   : > { %733 = shalt.err (!%p730_p3)
}
 0x1e2   : > { %647 = dma.vmem_to_hbm [thread:$0]  (%p847_p6), %s930_s9, 16, %s928_s13, %s516_s14  }
 0x1e3 PF: > { %s540_s8 = sand.u32 1, %s756_s18   ;;  %p650_p4 = pnand %p609_p9, %p851_p8 }
 0x1e4   : > { %s541_s10 = scalar_lea.sflag [#allocation5], %s540_s8 }
 0x1e5   : > { %751 = dma.done.wait (!%p650_p4), %s541_s10, 16  }
 0x1e6   : > { %753 = vsyncadd (!%p650_p4), %s541_s10, 4294967280  ;;  %p15_p5 = scmp.ge.s32.totalorder %s829_s24, 4   ;;  %s981_s18 = smov %s760_s19 }
 0x1e7   : > { %s982_s19 = smov %s764_s20  ;;  %s983_s20 = smov %s841_s27 }
 0x1e8   : > { %s984_s21 = smov %s829_s24  ;;  %17 = sbr.rel (!%p15_p5) target bundleno = 3 (0x3), region = 164 }
 0x1ef   :  { %545 = vsyncpa [#allocation5], 1 }
 0x1f0   :  { %547 = vsyncpa [#allocation5 + $0x1], 1 }

</bundles_post_ra>
